<compile_context>
chip_gen: v6e
topology: v6e:2x2x1
jax: 0.10.0
libtpu: 0.0.40
codegen_flags: <defaults>
</compile_context>

<pallas_src>
import functools

import jax
import jax.numpy as jnp
from jax import lax
from jax.experimental import pallas as pl
from jax.experimental.pallas import tpu as pltpu

H1, H2, H3 = 100, 50, 1  # hidden widths from the module definition


def _silu(x):
    return x * jax.nn.sigmoid(x)


def _round_up(x, m):
    return ((x + m - 1) // m) * m


def _default_silu_dtype():
    """bf16 SiLU on chips with bf16 VPU/EUP (v6e/v7x); f32 elsewhere (v5e...)."""
    try:
        kind = jax.devices()[0].device_kind.lower()
    except Exception:
        return jnp.float32
    if "v6" in kind or "v7" in kind:
        return jnp.bfloat16
    return jnp.float32


def neurnet_kernel(x_ref, w1_ref, b1_ref, w2_ref, b2_ref, w3_ref, b3_ref, o_ref,
                   *, compute_dtype, silu_dtype):
    # x_ref: (tile_m, d) f32 tile in native row-major layout.  Cast to the
    # matmul operand dtype in-kernel (VPU filler; avoids a wrapper HBM pass).
    xt = x_ref[...].astype(compute_dtype)

    # Layer 1: contract d (last dim of both operands) -> (H1, tile_m).
    # Batch lands on the lane axis; accumulation in f32.
    h1 = lax.dot_general(
        w1_ref[...], xt,
        dimension_numbers=(((1,), (1,)), ((), ())),
        preferred_element_type=jnp.float32,
    ) + b1_ref[...]
    h1 = _silu(h1.astype(silu_dtype)).astype(compute_dtype)

    # Layer 2: (H2, H1) @ (H1, tile_m) -> (H2, tile_m).
    h2 = jnp.dot(w2_ref[...], h1, preferred_element_type=jnp.float32) + b2_ref[...]
    h2 = _silu(h2.astype(silu_dtype)).astype(compute_dtype)

    # Layer 3: (1, H2) @ (H2, tile_m) -> (1, tile_m)  -- lane-dense output row.
    h3 = jnp.dot(w3_ref[...], h2, preferred_element_type=jnp.float32) + b3_ref[...]
    o_ref[...] = h3.astype(o_ref.dtype)


def neurnet_forward(x, params, *, tile_m=2048, compute_dtype=jnp.bfloat16,
                    silu_dtype=None):
    """x: (N, input_size) float32.  params: PyTorch-orientation w1,b1,w2,b2,w3,b3.

    Returns (N, 1) float32.  x is consumed in its native layout (no transpose /
    cast / pad pre-pass); the last grid block is ragged and its padded columns
    are discarded by the masked output store.
    """
    n, d = x.shape
    if silu_dtype is None:
        silu_dtype = _default_silu_dtype()

    # tile_m: multiple of 128/256, capped so the grid has >= ~8 parallel steps
    # (v7x megacore load balance; near-free on single-TC v5e/v6e), and capped
    # at the (rounded-up) batch size.
    tile_m = _round_up(max(tile_m, 128), 256)
    tile_m = min(tile_m, _round_up(pl.cdiv(n, 8), 128))
    tile_m = max(128, min(tile_m, _round_up(n, 128)))
    grid = (pl.cdiv(n, tile_m),)

    # Weights are tiny (< 100 KB total); cast once in the wrapper and keep them
    # resident in VMEM via constant index maps.  Biases stay f32 (added to the
    # f32 accumulator, broadcast across the lane/batch axis).
    w1 = params["w1"].astype(compute_dtype)  # (H1, d)
    w2 = params["w2"].astype(compute_dtype)  # (H2, H1)
    w3 = params["w3"].astype(compute_dtype)  # (H3, H2)
    b1 = params["b1"]                        # (H1, 1) f32
    b2 = params["b2"]                        # (H2, 1) f32
    b3 = params["b3"]                        # (H3, 1) f32

    full = lambda a: pl.BlockSpec(a.shape, lambda i: (0,) * a.ndim)

    kernel = functools.partial(
        neurnet_kernel, compute_dtype=compute_dtype, silu_dtype=silu_dtype)

    out = pl.pallas_call(
        kernel,
        out_shape=jax.ShapeDtypeStruct((1, n), jnp.float32),
        grid_spec=pltpu.PrefetchScalarGridSpec(
            num_scalar_prefetch=0,
            grid=grid,
            in_specs=[
                pl.BlockSpec((tile_m, d), lambda i: (i, 0)),  # native x tile
                full(w1), full(b1),
                full(w2), full(b2),
                full(w3), full(b3),
            ],
            out_specs=pl.BlockSpec((1, tile_m), lambda i: (0, i)),  # lane-dense
        ),
        compiler_params=pltpu.CompilerParams(
            dimension_semantics=("parallel",),
        ),
    )(x, w1, b1, w2, b2, w3, b3)

    return out.reshape(n, 1)


def init_params(key, input_size):
    """Deterministic init matching the PyTorch module's init scheme (in f32).

    - fc1, fc2 weights: kaiming_normal_(nonlinearity='relu')   -> std = sqrt(2 / fan_in)
    - fc3 weight:       kaiming_normal_(nonlinearity='linear') -> std = sqrt(1 / fan_in)
    - biases: PyTorch nn.Linear default, U(-1/sqrt(fan_in), 1/sqrt(fan_in))
    Weights in PyTorch orientation (out_features, in_features); biases as
    (out_features, 1) columns so they broadcast across the lane/batch axis.
    """
    ks = jax.random.split(key, 6)

    def kaiming(k, fan_out, fan_in, gain):
        std = gain / jnp.sqrt(jnp.asarray(fan_in, jnp.float32))
        return jax.random.normal(k, (fan_out, fan_in), jnp.float32) * std

    def bias(k, fan_out, fan_in):
        bound = 1.0 / jnp.sqrt(jnp.asarray(fan_in, jnp.float32))
        return jax.random.uniform(k, (fan_out, 1), jnp.float32, -bound, bound)

    g_relu = jnp.sqrt(2.0)
    g_lin = 1.0
    return {
        "w1": kaiming(ks[0], H1, input_size, g_relu),
        "b1": bias(ks[1], H1, input_size),
        "w2": kaiming(ks[2], H2, H1, g_relu),
        "b2": bias(ks[3], H2, H1),
        "w3": kaiming(ks[4], H3, H2, g_lin),
        "b3": bias(ks[5], H3, H2),
    }


def reference_forward(x, params, compute_dtype=jnp.float32, silu_dtype=jnp.float32):
    """Pure-JAX reference mirroring the kernel's dtype handling.

    With compute_dtype=bf16 the matmul operands are rounded like the kernel's;
    products are exact in f32, so only accumulation order and the SiLU
    (computed in silu_dtype) differ.  With all-f32 this is the plain
    single-precision semantics of the module.
    """
    cd = compute_dtype
    f32 = jnp.float32
    w1 = params["w1"].astype(cd).astype(f32)
    w2 = params["w2"].astype(cd).astype(f32)
    w3 = params["w3"].astype(cd).astype(f32)
    h1 = x.astype(cd).astype(f32) @ w1.T + params["b1"].T
    h1 = _silu(h1.astype(silu_dtype)).astype(cd).astype(f32)
    h2 = h1 @ w2.T + params["b2"].T
    h2 = _silu(h2.astype(silu_dtype)).astype(cd).astype(f32)
    return h2 @ w3.T + params["b3"].T


if __name__ == "__main__":
    key = jax.random.PRNGKey(0)
    k_x, k_p = jax.random.split(key)

    # Non-multiple batch exercises the ragged last block and a multi-step grid.
    batch, input_size = 300, 32
    x = jax.random.normal(k_x, (batch, input_size), jnp.float32)
    params = init_params(k_p, input_size)

    silu_dtype = _default_silu_dtype()
    out = neurnet_forward(x, params, silu_dtype=silu_dtype)
    out = jax.block_until_ready(out)
    assert out.shape == (batch, 1)

    # Check vs a reference that mirrors the kernel math (bf16 operands, f32
    # accumulation, same SiLU dtype): only accumulation order / transcendental
    # approximation differ.
    ref_match = reference_forward(x, params, compute_dtype=jnp.bfloat16,
                                  silu_dtype=silu_dtype)
    assert jnp.allclose(out, ref_match, atol=2e-2, rtol=2e-2), \
        "mismatch vs bf16-math reference"

    # Loose sanity check vs full-f32 module semantics (bf16 operand rounding).
    ref_f32 = reference_forward(x, params)
    assert jnp.allclose(out, ref_f32, atol=1.5e-1, rtol=1.5e-1), \
        "mismatch vs f32 reference"

    print("KERNEL_OK")
</pallas_src>

<mosaic_0001>
module attributes {stable_mosaic.version = 11 : i64} {
  func.func @neurnet_kernel(%arg0: i32, %arg1: memref<128x32xf32, #tpu.memory_space<vmem>>, %arg2: memref<100x32xbf16, #tpu.memory_space<vmem>>, %arg3: memref<100x1xf32, #tpu.memory_space<vmem>>, %arg4: memref<50x100xbf16, #tpu.memory_space<vmem>>, %arg5: memref<50x1xf32, #tpu.memory_space<vmem>>, %arg6: memref<1x50xbf16, #tpu.memory_space<vmem>>, %arg7: memref<1x1xf32, #tpu.memory_space<vmem>>, %arg8: memref<1x128xf32, #tpu.memory_space<vmem>>) attributes {dimension_semantics = [#tpu.dimension_semantics<parallel>], iteration_bounds = array<i64: 3>, scalar_prefetch = 0 : i64, scratch_operands = 0 : i64, tpu.core_type = #tpu.core_type<tc>, window_params = [{transform_indices = @transform_0, window_bounds = array<i64: 128, 32>}, {pipeline_mode = #tpu.pipeline_mode<synchronous>, transform_indices = @transform_1, window_bounds = array<i64: 100, 32>}, {pipeline_mode = #tpu.pipeline_mode<synchronous>, transform_indices = @transform_2, window_bounds = array<i64: 100, 1>}, {pipeline_mode = #tpu.pipeline_mode<synchronous>, transform_indices = @transform_3, window_bounds = array<i64: 50, 100>}, {pipeline_mode = #tpu.pipeline_mode<synchronous>, transform_indices = @transform_4, window_bounds = array<i64: 50, 1>}, {pipeline_mode = #tpu.pipeline_mode<synchronous>, transform_indices = @transform_5, window_bounds = array<i64: 1, 50>}, {pipeline_mode = #tpu.pipeline_mode<synchronous>, transform_indices = @transform_6, window_bounds = array<i64: 1, 1>}, {transform_indices = @transform_7, window_bounds = array<i64: 1, 128>}]} {
    %c0 = arith.constant 0 : index
    %c0_0 = arith.constant 0 : index
    %0 = vector.load %arg1[%c0, %c0_0] : memref<128x32xf32, #tpu.memory_space<vmem>>, vector<128x32xf32>
    %1 = arith.truncf %0 : vector<128x32xf32> to vector<128x32xbf16>
    %c0_1 = arith.constant 0 : index
    %c0_2 = arith.constant 0 : index
    %2 = vector.load %arg2[%c0_1, %c0_2] : memref<100x32xbf16, #tpu.memory_space<vmem>>, vector<100x32xbf16>
    %cst = arith.constant dense<0.000000e+00> : vector<100x128xf32>
    %3 = tpu.matmul %2, %1, %cst {dimension_numbers = #tpu.dot_dimension_numbers<[1], [1], [0], [0], [0, 0, 1, 0], [], []>} : vector<100x32xbf16>, vector<128x32xbf16>, vector<100x128xf32> -> vector<100x128xf32>
    %c0_3 = arith.constant 0 : index
    %c0_4 = arith.constant 0 : index
    %4 = vector.load %arg3[%c0_3, %c0_4] : memref<100x1xf32, #tpu.memory_space<vmem>>, vector<100x1xf32>
    %5 = vector.broadcast %4 : vector<100x1xf32> to vector<100x128xf32>
    %6 = arith.addf %3, %5 : vector<100x128xf32>
    %7 = arith.negf %6 : vector<100x128xf32>
    %8 = math.exp %7 : vector<100x128xf32>
    %cst_5 = arith.constant 1.000000e+00 : f32
    %9 = vector.broadcast %cst_5 : f32 to vector<100x128xf32>
    %10 = arith.addf %9, %8 : vector<100x128xf32>
    %11 = arith.divf %9, %10 : vector<100x128xf32>
    %12 = arith.mulf %6, %11 : vector<100x128xf32>
    %13 = arith.truncf %12 : vector<100x128xf32> to vector<100x128xbf16>
    %c0_6 = arith.constant 0 : index
    %c0_7 = arith.constant 0 : index
    %14 = vector.load %arg4[%c0_6, %c0_7] : memref<50x100xbf16, #tpu.memory_space<vmem>>, vector<50x100xbf16>
    %cst_8 = arith.constant dense<0.000000e+00> : vector<50x128xf32>
    %15 = tpu.matmul %14, %13, %cst_8 {dimension_numbers = #tpu.dot_dimension_numbers<[1], [0], [0], [1], [0, 0, 1, 1], [], []>} : vector<50x100xbf16>, vector<100x128xbf16>, vector<50x128xf32> -> vector<50x128xf32>
    %c0_9 = arith.constant 0 : index
    %c0_10 = arith.constant 0 : index
    %16 = vector.load %arg5[%c0_9, %c0_10] : memref<50x1xf32, #tpu.memory_space<vmem>>, vector<50x1xf32>
    %17 = vector.broadcast %16 : vector<50x1xf32> to vector<50x128xf32>
    %18 = arith.addf %15, %17 : vector<50x128xf32>
    %19 = arith.negf %18 : vector<50x128xf32>
    %20 = math.exp %19 : vector<50x128xf32>
    %cst_11 = arith.constant 1.000000e+00 : f32
    %21 = vector.broadcast %cst_11 : f32 to vector<50x128xf32>
    %22 = arith.addf %21, %20 : vector<50x128xf32>
    %23 = arith.divf %21, %22 : vector<50x128xf32>
    %24 = arith.mulf %18, %23 : vector<50x128xf32>
    %25 = arith.truncf %24 : vector<50x128xf32> to vector<50x128xbf16>
    %c0_12 = arith.constant 0 : index
    %c0_13 = arith.constant 0 : index
    %26 = vector.load %arg6[%c0_12, %c0_13] : memref<1x50xbf16, #tpu.memory_space<vmem>>, vector<1x50xbf16>
    %cst_14 = arith.constant dense<0.000000e+00> : vector<1x128xf32>
    %27 = tpu.matmul %26, %25, %cst_14 {dimension_numbers = #tpu.dot_dimension_numbers<[1], [0], [0], [1], [0, 0, 1, 1], [], []>} : vector<1x50xbf16>, vector<50x128xbf16>, vector<1x128xf32> -> vector<1x128xf32>
    %c0_15 = arith.constant 0 : index
    %c0_16 = arith.constant 0 : index
    %28 = vector.load %arg7[%c0_15, %c0_16] : memref<1x1xf32, #tpu.memory_space<vmem>>, vector<1x1xf32>
    %29 = vector.broadcast %28 : vector<1x1xf32> to vector<1x128xf32>
    %30 = arith.addf %27, %29 : vector<1x128xf32>
    %c0_17 = arith.constant 0 : index
    %c0_18 = arith.constant 0 : index
    %31 = vector.load %arg8[%c0_17, %c0_18] : memref<1x128xf32, #tpu.memory_space<vmem>>, vector<1x128xf32>
    tpu.vector_store %arg8[%c0_17, %c0_18], %30 {strides = array<i32>} : memref<1x128xf32, #tpu.memory_space<vmem>>, vector<1x128xf32>,
    return
  }
  func.func @transform_0(%arg0: i32) -> (i32, i32) {
    %c0_i32 = arith.constant 0 : i32
    %c0_i32_0 = arith.constant 0 : i32
    return %arg0, %c0_i32 : i32, i32
  }
  func.func @transform_1(%arg0: i32) -> (i32, i32) {
    %c0_i32 = arith.constant 0 : i32
    %c0_i32_0 = arith.constant 0 : i32
    %c0_i32_1 = arith.constant 0 : i32
    return %c0_i32, %c0_i32_0 : i32, i32
  }
  func.func @transform_2(%arg0: i32) -> (i32, i32) {
    %c0_i32 = arith.constant 0 : i32
    %c0_i32_0 = arith.constant 0 : i32
    %c0_i32_1 = arith.constant 0 : i32
    return %c0_i32, %c0_i32_0 : i32, i32
  }
  func.func @transform_3(%arg0: i32) -> (i32, i32) {
    %c0_i32 = arith.constant 0 : i32
    %c0_i32_0 = arith.constant 0 : i32
    %c0_i32_1 = arith.constant 0 : i32
    return %c0_i32, %c0_i32_0 : i32, i32
  }
  func.func @transform_4(%arg0: i32) -> (i32, i32) {
    %c0_i32 = arith.constant 0 : i32
    %c0_i32_0 = arith.constant 0 : i32
    %c0_i32_1 = arith.constant 0 : i32
    return %c0_i32, %c0_i32_0 : i32, i32
  }
  func.func @transform_5(%arg0: i32) -> (i32, i32) {
    %c0_i32 = arith.constant 0 : i32
    %c0_i32_0 = arith.constant 0 : i32
    %c0_i32_1 = arith.constant 0 : i32
    return %c0_i32, %c0_i32_0 : i32, i32
  }
  func.func @transform_6(%arg0: i32) -> (i32, i32) {
    %c0_i32 = arith.constant 0 : i32
    %c0_i32_0 = arith.constant 0 : i32
    %c0_i32_1 = arith.constant 0 : i32
    return %c0_i32, %c0_i32_0 : i32, i32
  }
  func.func @transform_7(%arg0: i32) -> (i32, i32) {
    %c0_i32 = arith.constant 0 : i32
    %c0_i32_0 = arith.constant 0 : i32
    return %c0_i32, %arg0 : i32, i32
  }
}

</mosaic_0001>

<bundles_post_ra>
// kernel: tpu_custom_call.1
= control target key start
LH: loop header
LB: loop body
LE: loop exit
PB: predicated region body
PF: predicated region fallthrough
CT: control target
= control target key end

     0   :  { %s1738_s0 = inlined_call_operand.vmem [shape: f32[300,32], index: 0, kind: input, shape index: {}]   ;;  %s1739_s1 = inlined_call_operand.vmem [shape: bf16[100,32], index: 1, kind: input, shape index: {}]   ;;  %s1740_s2 = inlined_call_operand.vmem [shape: f32[100,1], index: 2, kind: input, shape index: {}]   ;;  %s1741_s3 = inlined_call_operand.vmem [shape: bf16[50,100], index: 3, kind: input, shape index: {}]   ;;  %s1742_s4 = inlined_call_operand.vmem [shape: f32[50,1], index: 4, kind: input, shape index: {}]   ;;  %s1743_s5 = inlined_call_operand.vmem [shape: bf16[1,50], index: 5, kind: input, shape index: {}]   ;;  %s1744_s6 = inlined_call_operand.<no memory space> [shape: f32[1,1], index: 6, kind: input, shape index: {}]   ;;  %s1745_s7 = inlined_call_operand.hbm [shape: f32[1,300], index: 7, kind: output, shape index: {}]  }
   0x1   :  { %v12_v0 = vstv %s1744_s6 }
   0x2   :  { %13 = vst [vmem:[#allocation2] sm:$0x1] %v12_v0 }
   0x3   :  { %14 = vsyncpa [#allocation4], 0 }
   0x4   :  { %16 = vsyncpa [#allocation4 + $0x1], 0  ;;  %s1416_s26 = smov 0   ;;  %s1418_s27 = smov 0  }
   0x5   :  { %s1420_s28 = smov 0   ;;  %s1422_s29 = smov 0  }
   0x6 LB: > { %s1009_s6 = sadd.s32 4294967295, %s1367_s29   ;;  %s1010_s30 = sadd.s32 4294967294, %s1367_s29   ;;  %s1367_s29 = sphi %s1422_s29, %s1751_s29   ;;  %s1363_s28 = sphi %s1420_s28, %s1750_s28   ;;  %s1359_s27 = sphi %s1418_s27, %s1749_s27   ;;  %s1355_s26 = sphi %s1416_s26, %s1748_s26  }
   0x7   : > { %s1439_s8 = sadd.s32 1, %s1367_s29   ;;  %s181_s9 = sadd.s32 1, %s1363_s28 }
   0x8   : > { %s178_s10 = ssub.s32 %s1367_s29, %s1439_s8  ;;  %p191_p0 = scmp.ne.s32.totalorder %s1363_s28, %s1359_s27 }
   0x9   : > { %p179_p1 = scmp.eq.s32.totalorder %s178_s10, 0  ;;  %p192_p2 = scmp.eq.s32.totalorder %s1009_s6, 2 }
   0xa   : > { %p197_p3 = scmp.ne.s32.totalorder %s1359_s27, %s1355_s26  ;;  %p198_p4 = scmp.eq.s32.totalorder %s1010_s30, 2 }
   0xb   : > { %s1449_s11 = scalar_select %p179_p1, %s1363_s28, %s181_s9  }
   0xc   : > { %p1451_p5 = por %p192_p2, %p191_p0  ;;  %p1455_p6 = por %p198_p4, %p197_p3 }
   0xd   : > { %p1013_p7 = scmp.ge.s32.totalorder %s1367_s29, 1  ;;  %p251_p8 = scmp.lt.s32.totalorder %s1367_s29, 4 }
   0xf   : > { %p252_p9 = pnand %p1013_p7, %p251_p8 }
  0x10   : > { %s1461_s14 = sshll.u32 (!%p252_p9), %s1009_s6, 4  ;;  %s284_s6 = sand.u32 (!%p252_p9), 1, %s1359_s27  }
  0x11   : > { %255 = sbr.rel (%p252_p9) target bundleno = 865 (0x361), region = 48  ;;  %p291_p10 = scmp.lt.s32.totalorder (!%p252_p9), %s1461_s14, 37 }
  0x12   : > { %s285_s30 = scalar_lea.vmem (!%p252_p9), [#allocation3], %s284_s6  ;;  %s943_s17 = scalar_lea.sflag (!%p252_p9), [#allocation4], %s284_s6 }
  0x13   : > { %s955_s9 = sshll.u32 (!%p252_p9), %s285_s30, 4  ;;  %s1372_s20 = smov (!%p252_p9), [#allocation3]   ;;  %s1699_s9 = int_to_ptr.vmem [resolvable:$true] %s955_s9 }
  0x14   : > { %s1307_s18 = scalar_lea.vmem (!%p252_p9), %s1699_s9, 16  ;;  %s1311_s21 = sshll.u32 (!%p252_p9), %s1372_s20, 4  ;;  %s1312_s21 = int_to_ptr.vmem [resolvable:$false] %s1311_s21 }
  0x15   : > { %p1308_p11 = scmp.ne.s32.totalorder (!%p252_p9), %s1699_s9, %s1307_s18  ;;  %p1314_p0 = scmp.lt.s32.totalorder (!%p252_p9), %s1699_s9, %s1312_s21 }
  0x16   : > { %v1369_v1 = vmov 0.0   ;;  %vm1370_vm0 = vmmov 0   ;;  %s292_s15 = scalar_select %p291_p10, %s1461_s14, 37  ;;  %v1371_v2 = vmov 0   ;;  %vm449_vm1 = vcmask 261120   ;;  %v349_v10 = vld [vmem:[%s1740_s2 + $0x58] sm:$0xff] }
  0x17   : > { %1093 = vmatprep.subr.bf16.mxu0 %v1369_v1  ;;  %1109 = vmatprep.mubr.msk.bf16.mxu0 %vm1370_vm0, %v1369_v1  ;;  %v350_v11 = vld [vmem:[%s1740_s2 + $0x60] sm:$0xf]  ;;  %v348_v13 = vld [vmem:[%s1740_s2 + $0x50] sm:$0xff]  ;;  %v347_v18 = vld [vmem:[%s1740_s2 + $0x48] sm:$0xff]  ;;  %vm748_vm2 = vcmask 818176   ;;  %vm761_vm3 = vcmask 1041408   ;;  %p1309_p12 = pnand %p1308_p11, %p1451_p5 }
  0x18   : > { %1215 = vset.pattern.permute.xlu1 %v1371_v2  ;;  %1214 = vset.pattern.permute.xlu0 %v1371_v2  ;;  %s1015_s16 = sshll.u32 %s292_s15, 3  ;;  %v346_v12 = vld [vmem:[%s1740_s2 + $0x40] sm:$0xff]  ;;  %v344_v17 = vld [vmem:[%s1740_s2 + $0x30] sm:$0xff]  ;;  %v345_v21 = vld [vmem:[%s1740_s2 + $0x38] sm:$0xff]  ;;  %vm897_vm4 = vcmask 1040384   ;;  %vm893_vm5 = vcmask 408576  }
  0x19   : > { %s1471_s19 = scalar_lea.vmem %s1738_s0, %s1015_s16  ;;  %408 = vperm.xlu1 %1215, %v349_v10   ;;  %413 = vperm.xlu0 %1214, %v350_v11   ;;  %v342_v20 = vld [vmem:[%s1740_s2 + $0x20] sm:$0xff]  ;;  %v340_v25 = vld [vmem:[%s1740_s2 + $0x10] sm:$0xff]  ;;  %v343_v26 = vld [vmem:[%s1740_s2 + $0x28] sm:$0xff]  ;;  %s1697_s16 = scalar_lea.hbm %s1745_s7, %s1461_s14 }
  0x1a   : > { %v315_v3 = vld [vmem:[%s1471_s19 + $0x70] sm:$0xff]  ;;  %v316_v4 = vld [vmem:[%s1471_s19 + $0x78] sm:$0xff]  ;;  %v313_v6 = vld [vmem:[%s1471_s19 + $0x60] sm:$0xff]  ;;  %p1310_p13 = pneg %p1309_p12 }
  0x1b   : > { %v324_v5 = vpack.c.bf16 %v316_v4, %v315_v3  ;;  %v314_v7 = vld [vmem:[%s1471_s19 + $0x68] sm:$0xff]  ;;  %v311_v15 = vld [vmem:[%s1471_s19 + $0x50] sm:$0xff]  ;;  %v312_v16 = vld [vmem:[%s1471_s19 + $0x58] sm:$0xff] }
  0x1c   : > { %v323_v9 = vpack.c.bf16 %v314_v7, %v313_v6  ;;  %v322_v19 = vpack.c.bf16 %v312_v16, %v311_v15  ;;  %v309_v23 = vld [vmem:[%s1471_s19 + $0x40] sm:$0xff]  ;;  %v310_v24 = vld [vmem:[%s1471_s19 + $0x48] sm:$0xff]  ;;  %v341_v29 = vld [vmem:[%s1740_s2 + $0x18] sm:$0xff] }
  0x1d   : > { %v493_v8 = vsel %vm449_vm1, %v324_v5, 0  ;;  %393 = vperm.xlu1 %1215, %v346_v12   ;;  %403 = vperm.xlu0 %1214, %v348_v13   ;;  %v321_v27 = vpack.c.bf16 %v310_v24, %v309_v23  ;;  %v338_v28 = vld [vmem:[%s1740_s2] sm:$0xff]  ;;  %v307_v31 = vld [vmem:[%s1471_s19 + $0x30] sm:$0xff]  ;;  %v308_v32 = vld [vmem:[%s1471_s19 + $0x38] sm:$0xff] }
  0x1e   : > { %1094 = vmatpush3.bf16.xpose.msra.mxu0 %v493_v8  ;;  %v490_v14 = vsel %vm449_vm1, %v323_v9, 0  ;;  %v487_v22 = vsel %vm449_vm1, %v322_v19, 0  ;;  %v694_v33 = vld [vmem:[%s1742_s4 + $0x30] sm:$0x3]  ;;  %v339_v34 = vld [vmem:[%s1740_s2 + $0x8] sm:$0xff]  ;;  %v320_v35 = vpack.c.bf16 %v308_v32, %v307_v31  ;;  %v692_v37 = vld [vmem:[%s1742_s4 + $0x20] sm:$0xff] }
  0x1f   : > { %1095 = vmatprep.subr.bf16.mxu0 %v1369_v1  ;;  %v484_v30 = vsel %vm449_vm1, %v321_v27, 0  ;;  %v693_v36 = vld [vmem:[%s1742_s4 + $0x28] sm:$0xff]  ;;  %v305_v39 = vld [vmem:[%s1471_s19 + $0x20] sm:$0xff]  ;;  %v691_v41 = vld [vmem:[%s1742_s4 + $0x18] sm:$0xff] }
  0x20   : > { %v481_v38 = vsel %vm449_vm1, %v320_v35, 0  ;;  %v306_v40 = vld [vmem:[%s1471_s19 + $0x28] sm:$0xff]  ;;  %v690_v42 = vld [vmem:[%s1742_s4 + $0x10] sm:$0xff]  ;;  %v688_v45 = vld [vmem:[%s1742_s4] sm:$0xff] }
  0x21   : > { %383 = vperm.xlu1 %1215, %v344_v17   ;;  %398 = vperm.xlu0 %1214, %v347_v18   ;;  %v319_v43 = vpack.c.bf16 %v306_v40, %v305_v39  ;;  %v689_v44 = vld [vmem:[%s1742_s4 + $0x8] sm:$0xff]  ;;  %v303_v47 = vld [vmem:[%s1471_s19 + $0x10] sm:$0xff]  ;;  %v304_v48 = vld [vmem:[%s1471_s19 + $0x18] sm:$0xff] }
  0x22   : > { %v883_v49 = vld [vmem:[#allocation2] sm:$0x1]  ;;  %v318_v50 = vpack.c.bf16 %v304_v48, %v303_v47  ;;  %v302_v53 = vld [vmem:[%s1471_s19 + $0x8] sm:$0xff]  ;;  %v1218_v58 = vld [vmem:[%s1739_s1 + $0x10] sm:$0xff]  }
  0x23   : > { %v478_v46 = vsel %vm449_vm1, %v319_v43, 0  ;;  %v301_v52 = vld [vmem:[%s1471_s19] sm:$0xff]  ;;  %v1217_v57 = vld [vmem:[%s1739_s1 + $0x8] sm:$0xff]   ;;  %v1219_v59 = vld [vmem:[%s1739_s1 + $0x18] sm:$0xff]   ;;  %s1313_s19 = scalar_lea.vmem %s1312_s21, 32 }
  0x24   : > { %v475_v51 = vsel %vm449_vm1, %v318_v50, 0  ;;  %v317_v54 = vpack.c.bf16 %v302_v53, %v301_v52  ;;  %v1216_v56 = vld [vmem:[%s1739_s1] sm:$0xff]   ;;  %v1221_v61 = vld [vmem:[%s1739_s1 + $0x28] sm:$0xff]   ;;  %v1222_v62 = vld [vmem:[%s1739_s1 + $0x30] ss:$0 sps:$4 sm:$0x33]   ;;  %p1315_p1 = scmp.lt.s32.totalorder %s1313_s19, %s1307_s18 }
  0x25   : > { %373 = vperm.xlu1 %1215, %v342_v20   ;;  %388 = vperm.xlu0 %1214, %v345_v21   ;;  %v1220_v60 = vld [vmem:[%s1739_s1 + $0x20] sm:$0xff]  }
  0x26   : > { %1096 = vmatpush3.bf16.xpose.msra.mxu0 %v490_v14  ;;  %v472_v55 = vsel %vm449_vm1, %v317_v54, 0  ;;  %v1223_v7 = vld [vmem:[%s1741_s3] sm:$0xff]   ;;  %p1316_p2 = por %p1315_p1, %p1314_p0 }
  0x27   : > { %1097 = vmatprep.subr.bf16.mxu0 %v1369_v1  ;;  %1151 = vmatprep.mubr.msk.bf16.mxu1 %vm748_vm2, %v1223_v7 }
  0x28   : > { %p1317_p3 = pnand %p1316_p2, %p1310_p13 }
  0x29   : > { %363 = vperm.xlu1 %1215, %v340_v25   ;;  %378 = vperm.xlu0 %1214, %v343_v26  }
  0x2d   : > { %353 = vperm.xlu1 %1215, %v338_v28   ;;  %368 = vperm.xlu0 %1214, %v341_v29  }
  0x2e   : > { %1098 = vmatpush3.bf16.xpose.msra.mxu0 %v487_v22 }
  0x2f   : > { %1099 = vmatprep.subr.bf16.mxu0 %v1369_v1 }
  0x31   : > { %727 = vperm.xlu1 %1215, %v694_v33   ;;  %358 = vperm.xlu0 %1214, %v339_v34  }
  0x35   : > { %722 = vperm.xlu1 %1215, %v693_v36   ;;  %717 = vperm.xlu0 %1214, %v692_v37  }
  0x36   : > { %1100 = vmatpush3.bf16.xpose.msra.mxu0 %v484_v30 }
  0x37   : > { %1101 = vmatprep.subr.bf16.mxu0 %v1369_v1 }
  0x39   : > { %712 = vperm.xlu1 %1215, %v691_v41   ;;  %707 = vperm.xlu0 %1214, %v690_v42  }
  0x3d   : > { %702 = vperm.xlu1 %1215, %v689_v44   ;;  %697 = vperm.xlu0 %1214, %v688_v45  }
  0x3e   : > { %1102 = vmatpush3.bf16.xpose.msra.mxu0 %v481_v38 }
  0x3f   : > { %1103 = vmatprep.subr.bf16.mxu0 %v1369_v1 }
  0x41   : > { %886 = vperm.xlu0 %1214, %v883_v49  }
  0x46   : > { %1104 = vmatpush3.bf16.xpose.msra.mxu0 %v478_v46 }
  0x47   : > { %1105 = vmatprep.subr.bf16.mxu0 %v1369_v1 }
  0x4e   : > { %1106 = vmatpush3.bf16.xpose.msra.mxu0 %v475_v51 }
  0x4f   : > { %1107 = vmatprep.subr.bf16.mxu0 %v1369_v1 }
  0x56   : > { %1108 = vmatpush3.bf16.xpose.msra.mxu0 %v472_v55 }
  0x5d   : > { %1110 = vmatmul.mubr.msk.bf16.vlgmr.msra.gmra.mxu0 %vm449_vm1, %v1216_v56 }
  0x5e   : > { %1113 = vmatprep.mubr.msk.bf16.mxu0 %vm1370_vm0, %v1369_v1 }
  0x65   : > { %1114 = vmatmul.mubr.msk.bf16.gmra.mxu0 %vm449_vm1, %v1217_v57 }
  0x66   : > { %1117 = vmatprep.mubr.msk.bf16.mxu0 %vm1370_vm0, %v1369_v1 }
  0x6d   : > { %1118 = vmatmul.mubr.msk.bf16.gmra.mxu0 %vm449_vm1, %v1218_v58 }
  0x6e   : > { %1121 = vmatprep.mubr.msk.bf16.mxu0 %vm1370_vm0, %v1369_v1 }
  0x75   : > { %1122 = vmatmul.mubr.msk.bf16.gmra.mxu0 %vm449_vm1, %v1219_v59 }
  0x76   : > { %1125 = vmatprep.mubr.msk.bf16.mxu0 %vm1370_vm0, %v1369_v1 }
  0x7d   : > { %1126 = vmatmul.mubr.msk.bf16.gmra.mxu0 %vm449_vm1, %v1220_v60 }
  0x7e   : > { %1129 = vmatprep.mubr.msk.bf16.mxu0 %vm1370_vm0, %v1369_v1 }
  0x85   : > { %1130 = vmatmul.mubr.msk.bf16.gmra.mxu0 %vm449_vm1, %v1221_v61 }
  0x86   : > { %1133 = vmatprep.mubr.msk.bf16.mxu0 %vm1370_vm0, %v1369_v1 }
  0x8d   : > { %1134 = vmatmul.mubr.msk.bf16.gmra.mxu0 %vm449_vm1, %v1222_v62 }
  0x94   : > { %v1604_v63 = vpop.permute.xlu0 %413  ;;  %v409_v0 = vpop.permute.xlu1 %408 }
  0x98   : > { %v404_v2 = vpop.permute.xlu0 %403  ;;  %v394_v3 = vpop.permute.xlu1 %393 }
  0x9c   : > { %v399_v4 = vpop.permute.xlu0 %398  ;;  %v1606_v5 = vpop.permute.xlu1 %383 }
  0xa0   : > { %v389_v6 = vpop.permute.xlu0 %388  ;;  %v1611_v8 = vpop.permute.xlu1 %373 }
  0xa4   : > { %v379_v9 = vpop.permute.xlu0 %378  ;;  %v1614_v10 = vpop.permute.xlu1 %363 }
  0xa8   : > { %v1616_v11 = vpop.permute.xlu0 %368  ;;  %v354_v12 = vpop.permute.xlu1 %353 }
  0xac   : > { %v359_v16 = vpop.permute.xlu0 %358 }
 0x11d   : > { %v529_v13 = vpop.f32.mrf.mxu0 }
 0x11e   : > { %v530_v14 = vadd.f32 %v529_v13, %v354_v12 }
 0x11f   : > { %v1111_v15 = vpop.f32.mrf.mxu0 }
 0x120   : > { %v1030_v17 = vmul.f32 -1.442695, %v530_v14 }
 0x121   : > { %v532_v18 = vpop.f32.mrf.mxu0 }
 0x122   : > { %1227 = vpow2.f32 %v1030_v17  ;;  %v533_v19 = vadd.f32 %v532_v18, %v359_v16 }
 0x123   : > { %v1112_v20 = vpop.f32.mrf.mxu0 }
 0x124   : > { %v1031_v21 = vmul.f32 -1.442695, %v533_v19 }
 0x125   : > { %v537_v22 = vpop.f32.mrf.mxu0 }
 0x126   : > { %1229 = vpow2.f32 %v1031_v21 }
 0x127   : > { %v1115_v23 = vpop.f32.mrf.mxu0 }
 0x129   : > { %v540_v24 = vpop.f32.mrf.mxu0 }
 0x12b   : > { %v1116_v25 = vpop.f32.mrf.mxu0 }
 0x12d   : > { %v545_v26 = vpop.f32.mrf.mxu0 }
 0x12e   : > { %v1642_v7 = vadd.f32 %v545_v26, %v1611_v8 }
 0x12f   : > { %v1228_v27 = vpop.eup %1227  ;;  %v1119_v28 = vpop.f32.mrf.mxu0 }
 0x130   : > { %v622_v29 = vadd.f32 1.0, %v1228_v27 }
 0x131   : > { %v548_v30 = vpop.f32.mrf.mxu0 }
 0x132   : > { %1231 = vrcp.f32 %v622_v29 }
 0x133   : > { %v1230_v31 = vpop.eup %1229  ;;  %v1120_v32 = vpop.f32.mrf.mxu0 }
 0x134   : > { %v623_v33 = vadd.f32 1.0, %v1230_v31 }
 0x135   : > { %v553_v34 = vpop.f32.mrf.mxu0 }
 0x136   : > { %1233 = vrcp.f32 %v623_v33  ;;  %v1636_v62 = vadd.f32 %v553_v34, %v1606_v5 }
 0x137   : > { %v1123_v35 = vpop.f32.mrf.mxu0 }
 0x138   : > { %v1036_v12 = vmul.f32 -1.442695, %v1636_v62 }
 0x139   : > { %v556_v36 = vpop.f32.mrf.mxu0 }
 0x13a   : > { %v1630_v57 = vadd.f32 %v556_v36, %v389_v6 }
 0x13b   : > { %v1124_v37 = vpop.f32.mrf.mxu0 }
 0x13d   : > { %v561_v38 = vpop.f32.mrf.mxu0 }
 0x13e   : > { %v1625_v53 = vadd.f32 %v561_v38, %v394_v3  ;;  %v1638_v3 = vadd.f32 %v548_v30, %v379_v9  ;;  %v1650_v9 = vadd.f32 %v537_v22, %v1614_v10 }
 0x13f   : > { %v1127_v39 = vpop.f32.mrf.mxu0  ;;  %v1232_v40 = vpop.eup %1231 }
 0x140   : > { %v661_v44 = vmul.f32 %v1232_v40, %v530_v14  ;;  %v1038_v60 = vmul.f32 -1.442695, %v1625_v53  ;;  %v1035_v5 = vmul.f32 -1.442695, %v1638_v3  ;;  %v1034_v14 = vmul.f32 -1.442695, %v1642_v7 }
 0x141   : > { %v564_v41 = vpop.f32.mrf.mxu0  ;;  %v1032_v17 = vmul.f32 -1.442695, %v1650_v9 }
 0x142   : > { %v1622_v50 = vadd.f32 %v564_v41, %v399_v4  ;;  %v1037_v4 = vmul.f32 -1.442695, %v1630_v57 }
 0x143   : > { %v1234_v42 = vpop.eup %1233  ;;  %v1128_v43 = vpop.f32.mrf.mxu0 }
 0x144   : > { %v662_v45 = vmul.f32 %v1234_v42, %v533_v19  ;;  %v1039_v58 = vmul.f32 -1.442695, %v1622_v50 }
 0x145   : > { %v569_v46 = vpop.f32.mrf.mxu0 }
 0x146   : > { %v1618_v47 = vadd.f32 %v569_v46, %v404_v2  ;;  %v1620_v48 = vpack.c.bf16 %v662_v45, %v661_v44 }
 0x147   : > { %v1131_v49 = vpop.f32.mrf.mxu0 }
 0x148   : > { %v1040_v51 = vmul.f32 -1.442695, %v1618_v47 }
 0x149   : > { %v572_v52 = vpop.f32.mrf.mxu0 }
 0x14a   : > { %v1627_v54 = vadd.f32 %v572_v52, %v409_v0  ;;  %1235 = vpow2.f32 %v1040_v51 }
 0x14b   : > { %v1132_v55 = vpop.f32.mrf.mxu0 }
 0x14c   : > { %v1041_v56 = vmul.f32 -1.442695, %v1627_v54 }
 0x14d   : > { %v577_v59 = vpop.f32.mrf.mxu0 }
 0x14e   : > { %1237 = vpow2.f32 %v1041_v56  ;;  %v578_v61 = vadd.f32 %v577_v59, %v1604_v63  ;;  %v1646_v63 = vadd.f32 %v540_v24, %v1616_v11 }
 0x14f   : > { %v1135_v2 = vpop.f32.mrf.mxu0  ;;  %1239 = vpow2.f32 %v1039_v58 }
 0x150   : > { %v1042_v0 = vmul.f32 -1.442695, %v578_v61  ;;  %1241 = vpow2.f32 %v1038_v60  ;;  %v1033_v15 = vmul.f32 -1.442695, %v1646_v63 }
 0x151   : > { %v580_v6 = vpop.f32.mrf.mxu0 }
 0x152   : > { %1243 = vpow2.f32 %v1042_v0 }
 0x153   : > { %v1136_v13 = vpop.f32.mrf.mxu0  ;;  %1245 = vpow2.f32 %v1037_v4 }
 0x154   : > { %1247 = vpow2.f32 %v1036_v12  ;;  %v718_v13 = vpop.permute.xlu0 %717 }
 0x155   : > { %1249 = vpow2.f32 %v1035_v5 }
 0x156   : > { %1251 = vpow2.f32 %v1034_v14 }
 0x157   : > { %v1236_v8 = vpop.eup %1235  ;;  %1253 = vpow2.f32 %v1033_v15 }
 0x158   : > { %v632_v19 = vadd.f32 1.0, %v1236_v8  ;;  %1255 = vpow2.f32 %v1032_v17  ;;  %v708_v15 = vpop.permute.xlu0 %707 }
 0x15b   : > { %v1238_v16 = vpop.eup %1237 }
 0x15c   : > { %v633_v11 = vadd.f32 1.0, %v1238_v16  ;;  %v1240_v18 = vpop.eup %1239 }
 0x15d   : > { %v1242_v20 = vpop.eup %1241  ;;  %v631_v10 = vadd.f32 1.0, %v1240_v18 }
 0x15e   : > { %1257 = vrcp.f32 %v633_v11  ;;  %v630_v24 = vadd.f32 1.0, %v1242_v20 }
 0x15f   : > { %v1244_v21 = vpop.eup %1243  ;;  %1259 = vrcp.f32 %v632_v19 }
 0x160   : > { %v634_v22 = vadd.f32 1.0, %v1244_v21  ;;  %v1246_v23 = vpop.eup %1245 }
 0x161   : > { %v1248_v25 = vpop.eup %1247  ;;  %v629_v26 = vadd.f32 1.0, %v1246_v23 }
 0x162   : > { %1261 = vrcp.f32 %v634_v22  ;;  %v1250_v27 = vpop.eup %1249  ;;  %v628_v28 = vadd.f32 1.0, %v1248_v25 }
 0x163   : > { %1263 = vrcp.f32 %v631_v10  ;;  %v1252_v29 = vpop.eup %1251  ;;  %v627_v30 = vadd.f32 1.0, %v1250_v27 }
 0x164   : > { %1265 = vrcp.f32 %v630_v24  ;;  %v1254_v31 = vpop.eup %1253  ;;  %v626_v32 = vadd.f32 1.0, %v1252_v29  ;;  %v698_v24 = vpop.permute.xlu0 %697 }
 0x165   : > { %1267 = vrcp.f32 %v629_v26  ;;  %v1256_v33 = vpop.eup %1255  ;;  %v625_v34 = vadd.f32 1.0, %v1254_v31 }
 0x166   : > { %1269 = vrcp.f32 %v628_v28  ;;  %v624_v37 = vadd.f32 1.0, %v1256_v33 }
 0x167   : > { %1271 = vrcp.f32 %v627_v30 }
 0x168   : > { %1273 = vrcp.f32 %v626_v32 }
 0x169   : > { %1275 = vrcp.f32 %v625_v34 }
 0x16a   : > { %1277 = vrcp.f32 %v624_v37 }
 0x16b   : > { %v1258_v35 = vpop.eup %1257 }
 0x16c   : > { %v1260_v36 = vpop.eup %1259  ;;  %v672_v39 = vmul.f32 %v1258_v35, %v1627_v54 }
 0x16d   : > { %v671_v42 = vmul.f32 %v1260_v36, %v1618_v47 }
 0x16f   : > { %v1262_v38 = vpop.eup %1261  ;;  %v679_v49 = vpack.c.bf16 %v672_v39, %v671_v42 }
 0x170   : > { %v673_v40 = vmul.f32 %v1262_v38, %v578_v61  ;;  %v1264_v41 = vpop.eup %1263 }
 0x171   : > { %v1266_v44 = vpop.eup %1265  ;;  %v670_v45 = vmul.f32 %v1264_v41, %v1622_v50 }
 0x172   : > { %v680_v43 = vpack.c.bf16 %v673_v40, %v673_v40  ;;  %v1268_v51 = vpop.eup %1267  ;;  %v669_v52 = vmul.f32 %v1266_v44, %v1625_v53 }
 0x173   : > { %v1270_v55 = vpop.eup %1269  ;;  %v668_v54 = vmul.f32 %v1268_v51, %v1630_v57 }
 0x174   : > { %1171 = vmatprep.subr.msk.bf16.mxu1 %vm761_vm3, %v680_v43  ;;  %v763_v46 = vsel %vm761_vm3, %v680_v43, 0  ;;  %v678_v56 = vpack.c.bf16 %v670_v45, %v669_v52  ;;  %v1272_v58 = vpop.eup %1271  ;;  %v667_v47 = vmul.f32 %v1270_v55, %v1636_v62  ;;  %v1224_v62 = vld [vmem:[%s1741_s3 + $0x8] sm:$0xff]  }
 0x175   : > { %1138 = vmatpush3.bf16.msra.mxu1 %v763_v46  ;;  %v1274_v59 = vpop.eup %1273  ;;  %v666_v50 = vmul.f32 %v1272_v58, %v1638_v3  ;;  %v1225_v3 = vld [vmem:[%s1741_s3 + $0x10] sm:$0xff]  }
 0x176   : > { %1139 = vmatprep.subr.bf16.mxu1 %v679_v49  ;;  %v677_v60 = vpack.c.bf16 %v668_v54, %v667_v47  ;;  %v1276_v61 = vpop.eup %1275  ;;  %v665_v2 = vmul.f32 %v1274_v59, %v1642_v7  ;;  %v1226_v7 = vld [vmem:[%s1741_s3 + $0x18] ss:$0 sps:$4 sm:$0x11]  }
 0x177   : > { %v1278_v53 = vpop.eup %1277  ;;  %v664_v0 = vmul.f32 %v1276_v61, %v1646_v63 }
 0x178   : > { %v676_v4 = vpack.c.bf16 %v666_v50, %v665_v2  ;;  %v663_v57 = vmul.f32 %v1278_v53, %v1650_v9 }
 0x179   : > { %1140 = vmatpush3.bf16.msra.mxu1 %v679_v49 }
 0x17a   : > { %1141 = vmatprep.subr.bf16.mxu1 %v678_v56  ;;  %v675_v6 = vpack.c.bf16 %v664_v0, %v663_v57 }
 0x17d   : > { %1142 = vmatpush3.bf16.msra.mxu1 %v678_v56 }
 0x17e   : > { %1143 = vmatprep.subr.bf16.mxu1 %v677_v60 }
 0x181   : > { %1144 = vmatpush3.bf16.msra.mxu1 %v677_v60 }
 0x182   : > { %1145 = vmatprep.subr.bf16.mxu1 %v676_v4 }
 0x185   : > { %1146 = vmatpush3.bf16.msra.mxu1 %v676_v4 }
 0x186   : > { %1147 = vmatprep.subr.bf16.mxu1 %v675_v6 }
 0x189   : > { %1148 = vmatpush3.bf16.msra.mxu1 %v675_v6 }
 0x18a   : > { %1149 = vmatprep.subr.bf16.mxu1 %v1620_v48 }
 0x18d   : > { %1150 = vmatpush3.bf16.msra.mxu1 %v1620_v48  ;;  %v728_v48 = vpop.permute.xlu1 %727 }
 0x18e   : > { %1159 = vmatprep.subr.bf16.mxu1 %v1369_v1 }
 0x190   : > { %1152 = vmatmul.mubr.msk.bf16.vlgmr.msra.gmra.mxu1 %vm748_vm2, %v1224_v62 }
 0x191   : > { %1155 = vmatprep.mubr.msk.bf16.mxu1 %vm748_vm2, %v1225_v3  ;;  %v723_v12 = vpop.permute.xlu1 %722 }
 0x195   : > { %v713_v9 = vpop.permute.xlu1 %712 }
 0x198   : > { %1156 = vmatmul.mubr.msk.bf16.gmra.mxu1 %vm748_vm2, %v1226_v7  ;;  %v882_v7 = vld [vmem:[%s1743_s5] sm:$0x1] }
 0x199   : > { %1167 = vmatprep.mubr.msk.bf16.mxu1 %vm1370_vm0, %v1369_v1  ;;  %v703_v11 = vpop.permute.xlu1 %702 }
 0x250   : > { %v1153_v63 = vpop.f32.mrf.mxu1 }
 0x251   : > { %v808_v18 = vadd.f32 %v1153_v63, %v708_v15  ;;  %v887_v63 = vpop.permute.xlu0 %886 }
 0x252   : > { %v799_v5 = vpop.f32.mrf.mxu1 }
 0x253   : > { %v1053_v26 = vmul.f32 -1.442695, %v808_v18  ;;  %v800_v27 = vadd.f32 %v799_v5, %v698_v24 }
 0x254   : > { %v1154_v14 = vpop.f32.mrf.mxu1 }
 0x255   : > { %v811_v8 = vadd.f32 %v1154_v14, %v713_v9  ;;  %v1051_v32 = vmul.f32 -1.442695, %v800_v27 }
 0x256   : > { %v802_v16 = vpop.f32.mrf.mxu1 }
 0x257   : > { %v1054_v20 = vmul.f32 -1.442695, %v811_v8  ;;  %v1682_v21 = vadd.f32 %v802_v16, %v703_v11 }
 0x258   : > { %v1157_v17 = vpop.f32.mrf.mxu1 }
 0x259   : > { %v824_v19 = vadd.f32 %v1157_v17, %v728_v48  ;;  %v1052_v29 = vmul.f32 -1.442695, %v1682_v21  ;;  %v889_v48 = vlaneseq }
 0x25a   : > { %v815_v10 = vpop.f32.mrf.mxu1 }
 0x25b   : > { %v1057_v22 = vmul.f32 -1.442695, %v824_v19  ;;  %v816_v23 = vadd.f32 %v815_v10, %v718_v13 }
 0x25c   : > { %v1158_v25 = vpop.f32.mrf.mxu1 }
 0x25d   : > { %1279 = vpow2.f32 %v1057_v22  ;;  %v1055_v28 = vmul.f32 -1.442695, %v816_v23 }
 0x25e   : > { %1281 = vpow2.f32 %v1054_v20  ;;  %v818_v30 = vpop.f32.mrf.mxu1 }
 0x25f   : > { %1283 = vpow2.f32 %v1055_v28  ;;  %v819_v31 = vadd.f32 %v818_v30, %v723_v12  ;;  %v890_v12 = vshrl.u32 %v889_v48, 7 }
 0x260   : > { %1285 = vpow2.f32 %v1053_v26 }
 0x261   : > { %v1056_v33 = vmul.f32 -1.442695, %v819_v31  ;;  %1287 = vpow2.f32 %v1052_v29  ;;  %v891_v13 = vsub.s32 0, %v890_v12 }
 0x263   : > { %1289 = vpow2.f32 %v1056_v33  ;;  %v892_v5 = vrot.slane %v887_v63, %v891_v13 }
 0x264   : > { %1291 = vpow2.f32 %v1051_v32 }
 0x26a   : > { %v1280_v34 = vpop.eup %1279 }
 0x26b   : > { %v1282_v35 = vpop.eup %1281  ;;  %v856_v36 = vadd.f32 1.0, %v1280_v34 }
 0x26c   : > { %v1284_v37 = vpop.eup %1283  ;;  %v853_v40 = vadd.f32 1.0, %v1282_v35 }
 0x26d   : > { %1293 = vrcp.f32 %v856_v36  ;;  %v854_v38 = vadd.f32 1.0, %v1284_v37  ;;  %v1286_v39 = vpop.eup %1285 }
 0x26e   : > { %v1288_v41 = vpop.eup %1287  ;;  %v852_v43 = vadd.f32 1.0, %v1286_v39 }
 0x26f   : > { %1295 = vrcp.f32 %v854_v38  ;;  %v851_v46 = vadd.f32 1.0, %v1288_v41 }
 0x270   : > { %v1290_v42 = vpop.eup %1289  ;;  %1297 = vrcp.f32 %v853_v40 }
 0x271   : > { %v855_v44 = vadd.f32 1.0, %v1290_v42  ;;  %v1292_v45 = vpop.eup %1291 }
 0x272   : > { %v850_v49 = vadd.f32 1.0, %v1292_v45 }
 0x273   : > { %1299 = vrcp.f32 %v855_v44 }
 0x274   : > { %1301 = vrcp.f32 %v852_v43 }
 0x275   : > { %1303 = vrcp.f32 %v851_v46 }
 0x276   : > { %1305 = vrcp.f32 %v850_v49 }
 0x27a   : > { %v1294_v51 = vpop.eup %1293 }
 0x27b   : > { %v877_v52 = vmul.f32 %v1294_v51, %v824_v19 }
 0x27c   : > { %v1296_v54 = vpop.eup %1295 }
 0x27d   : > { %v881_v55 = vpack.c.bf16 %v877_v52, %v877_v52  ;;  %v1298_v56 = vpop.eup %1297  ;;  %v875_v59 = vmul.f32 %v1296_v54, %v816_v23 }
 0x27e   : > { %v874_v61 = vmul.f32 %v1298_v56, %v811_v8 }
 0x27f   : > { %v899_v58 = vsel %vm897_vm4, %v881_v55, 0 }
 0x280   : > { %v1300_v47 = vpop.eup %1299  ;;  %1160 = vmatpush3.bf16.msra.mxu1 %v899_v58 }
 0x281   : > { %v876_v50 = vmul.f32 %v1300_v47, %v819_v31  ;;  %1161 = vmatprep.subr.bf16.mxu1 %v1369_v1  ;;  %v1302_v60 = vpop.eup %1301 }
 0x282   : > { %v1304_v53 = vpop.eup %1303  ;;  %v873_v0 = vmul.f32 %v1302_v60, %v808_v18 }
 0x283   : > { %v880_v2 = vpack.c.bf16 %v876_v50, %v875_v59  ;;  %v1306_v4 = vpop.eup %1305  ;;  %v872_v6 = vmul.f32 %v1304_v53, %v1682_v21 }
 0x284   : > { %v879_v57 = vpack.c.bf16 %v874_v61, %v873_v0  ;;  %v871_v62 = vmul.f32 %v1306_v4, %v800_v27 }
 0x285   : > { %1162 = vmatpush3.bf16.msra.mxu1 %v880_v2 }
 0x286   : > { %1163 = vmatprep.subr.bf16.mxu1 %v1369_v1  ;;  %v878_v3 = vpack.c.bf16 %v872_v6, %v871_v62 }
 0x289   : > { %1164 = vmatpush3.bf16.msra.mxu1 %v879_v57 }
 0x28a   : > { %1165 = vmatprep.subr.bf16.mxu1 %v1369_v1 }
 0x28d   : > { %1166 = vmatpush3.bf16.msra.mxu1 %v878_v3 }
 0x290   : > { %1168 = vmatmul.mubr.msk.bf16.vlgmr.msra.gmra.mxu1 %vm893_vm5, %v882_v7 }
 0x350   : > { %v935_v9 = vpop.f32.mrf.mxu1 }
 0x351   : > { %v936_v1 = vadd.f32 %v935_v9, %v892_v5 }
 0x352   : > { %v1169_v14 = vpop.f32.mrf.mxu1 }
 0x353   : > { %941 = vst [vmem:[%s285_s30] sm:$0x1] %v936_v1 }
 0x354   : > { %v938_v15 = vpop.f32.mrf.mxu1 }
 0x355   : > { %1320 = shalt.err (!%p1317_p3)
}
 0x356   : > { %s1321_s14 = scalar_lea.hbm %s1697_s16, 16  ;;  %s1325_s24 = scalar_lea.hbm %s1745_s7, 48 }
 0x357   : > { %p1322_p4 = scmp.ne.s32.totalorder %s1697_s16, %s1321_s14  ;;  %p1326_p9 = scmp.lt.s32.totalorder %s1697_s16, %s1745_s7 }
 0x358   : > { %p1327_p10 = scmp.lt.s32.totalorder %s1325_s24, %s1321_s14 }
 0x359   : > { %p1323_p7 = pnand %p1322_p4, %p1451_p5 }
 0x35a   : > { %p1328_p11 = por %p1327_p10, %p1326_p9 }
 0x35b   : > { %p1324_p8 = pneg %p1323_p7 }
 0x35d   : > { %p1329_p12 = pnand %p1328_p11, %p1324_p8 }
 0x35f   : > { %1332 = shalt.err (!%p1329_p12)
}
 0x360   : > { %1172 = dma.vmem_to_hbm [thread:$0]  (%p1451_p5), %s1699_s9, 16, %s1697_s16, %s943_s17   ;;  %v1170_v8 = vpop.f32.mrf.mxu1 }
 0x361 PF: > { %p1178_p13 = scmp.ge.s32.totalorder %s1367_s29, 2  ;;  %s967_s30 = sand.u32 1, %s1355_s26  }
 0x362   : > { %s968_s10 = scalar_lea.sflag [#allocation4], %s967_s30 }
 0x363   : > { %p1175_p0 = pnand %p1178_p13, %p1455_p6 }
 0x365   : > { %p1176_p1 = pneg %p1175_p0 }
 0x367   : > { %1350 = dma.done.wait (%p1176_p1), %s968_s10, 16  }
 0x368   : > { %1352 = vsyncadd (%p1176_p1), %s968_s10, 4294967280  ;;  %p19_p2 = scmp.ge.s32.totalorder %s1439_s8, 5   ;;  %s1748_s26 = smov %s1359_s27 }
 0x369   : > { %s1749_s27 = smov %s1363_s28  ;;  %s1750_s28 = smov %s1449_s11 }
 0x36a   : > { %s1751_s29 = smov %s1439_s8  ;;  %21 = sbr.rel (!%p19_p2) target bundleno = 6 (0x6), region = 83 }
 0x36f   :  { %972 = vsyncpa [#allocation4], 1 }
 0x370   :  { %974 = vsyncpa [#allocation4 + $0x1], 1 }

</bundles_post_ra>
